<compile_context>
chip_gen: v7x
topology: tpu7x:2x2x1
jax: 0.10.0
libtpu: 0.0.40
codegen_flags: <defaults>
</compile_context>

<pallas_src>
import jax
import jax.numpy as jnp
from jax.experimental import pallas as pl
from jax.experimental.pallas import tpu as pltpu


def _round_up(x, m):
    return ((x + m - 1) // m) * m


def actor_kernel(x_ref, w1_ref, b1_ref, w2_ref, b2_ref, w3_ref, b3_ref, o_ref):
    x = x_ref[...]

    h1 = jnp.dot(x, w1_ref[...], preferred_element_type=jnp.float32) + b1_ref[...]
    h1 = jnp.maximum(h1, 0.0)  # ReLU

    h2 = jnp.dot(h1, w2_ref[...], preferred_element_type=jnp.float32) + b2_ref[...]
    h2 = jnp.maximum(h2, 0.0)  # ReLU

    logits = jnp.dot(h2, w3_ref[...], preferred_element_type=jnp.float32) + b3_ref[...]

    # Numerically-stable softmax over the feature axis. Softmax is row-local,
    # so any garbage in the (masked-on-store) tail rows of a partial batch
    # tile cannot contaminate valid rows.
    m = jnp.max(logits, axis=1, keepdims=True)
    e = jnp.exp(logits - m)
    denom = jnp.sum(e, axis=1, keepdims=True)
    o_ref[...] = (e / denom).astype(o_ref.dtype)


def actor_forward(x, params, *, block_rows=4096):
    """x: (B, numberOfInputs) float32. params: dict of transposed weights/biases."""
    w1, b1, w2, b2, w3, b3 = (
        params["w1"], params["b1"], params["w2"], params["b2"], params["w3"], params["b3"]
    )
    B, n_in = x.shape
    n_out = w3.shape[1]

    # Row tile: a multiple of 8, at most `block_rows`, and no larger than
    # ~ceil(B/2) so moderate batches still give >= 2 grid steps (v7x megacore
    # sharding via "parallel"). No HBM-side padding of x or the output: the
    # ragged final tile is handled by Pallas partial-block masking.
    tb = max(8, min(block_rows, _round_up(pl.cdiv(B, 2), 8)))
    grid = (pl.cdiv(B, tb),)

    # Weights/biases: full-array blocks with a constant block index -> resident
    # in VMEM, DMA'd only on the first grid step.
    def resident(a):
        return pl.BlockSpec(a.shape, lambda i: (0,) * a.ndim)

    out = pl.pallas_call(
        actor_kernel,
        out_shape=jax.ShapeDtypeStruct((B, n_out), jnp.float32),
        grid=grid,
        in_specs=[
            pl.BlockSpec((tb, n_in), lambda i: (i, 0)),  # streamed activations
            resident(w1), resident(b1),
            resident(w2), resident(b2),
            resident(w3), resident(b3),
        ],
        out_specs=pl.BlockSpec((tb, n_out), lambda i: (i, 0)),
        compiler_params=pltpu.CompilerParams(
            dimension_semantics=("parallel",),  # megacore sharding on v7x
        ),
    )(x, w1, b1, w2, b2, w3, b3)

    return out


def init_actor_params(key, number_of_inputs, number_of_outputs):
    """Deterministic init mirroring Actor.__init__ shapes (weights stored transposed)."""
    ks = jax.random.split(key, 6)

    def linear(kw, kb, fan_in, fan_out):
        # PyTorch default init: U(-1/sqrt(fan_in), 1/sqrt(fan_in))
        bound = 1.0 / jnp.sqrt(jnp.float32(fan_in))
        w = jax.random.uniform(kw, (fan_in, fan_out), jnp.float32, -bound, bound)
        b = jax.random.uniform(kb, (1, fan_out), jnp.float32, -bound, bound)
        return w, b

    w1, b1 = linear(ks[0], ks[1], number_of_inputs, 40)
    w2, b2 = linear(ks[2], ks[3], 40, 10)
    w3, b3 = linear(ks[4], ks[5], 10, number_of_outputs)
    return {"w1": w1, "b1": b1, "w2": w2, "b2": b2, "w3": w3, "b3": b3}


def _actor_reference(x, params):
    h1 = jnp.maximum(x @ params["w1"] + params["b1"], 0.0)
    h2 = jnp.maximum(h1 @ params["w2"] + params["b2"], 0.0)
    logits = h2 @ params["w3"] + params["b3"]
    return jax.nn.softmax(logits, axis=1)


if __name__ == "__main__":
    key = jax.random.PRNGKey(0)
    k_x, k_x2, k_p = jax.random.split(key, 3)

    number_of_inputs = 32
    number_of_outputs = 4
    params = init_actor_params(k_p, number_of_inputs, number_of_outputs)

    # --- small batch (single grid step, partial row tile) ---------------------
    batch = 2
    x = jax.random.normal(k_x, (batch, number_of_inputs), dtype=jnp.float32)
    out = jax.block_until_ready(actor_forward(x, params))
    assert out.shape == (batch, number_of_outputs)
    assert jnp.allclose(jnp.sum(out, axis=1), jnp.ones((batch,)), atol=1e-5)
    assert jnp.allclose(out, _actor_reference(x, params), atol=1e-5, rtol=1e-5)

    # --- batch that exercises multiple grid steps + a ragged last tile --------
    batch2 = 20  # tb=16 -> grid=2, last tile has 4 valid rows
    x2 = jax.random.normal(k_x2, (batch2, number_of_inputs), dtype=jnp.float32)
    out2 = jax.block_until_ready(actor_forward(x2, params))
    assert out2.shape == (batch2, number_of_outputs)
    assert jnp.allclose(jnp.sum(out2, axis=1), jnp.ones((batch2,)), atol=1e-5)
    assert jnp.allclose(out2, _actor_reference(x2, params), atol=1e-5, rtol=1e-5)

    print("KERNEL_OK")
</pallas_src>

<mosaic_0001>
module attributes {stable_mosaic.version = 11 : i64} {
  func.func @actor_kernel(%arg0: i32, %arg1: memref<8x32xf32, #tpu.memory_space<vmem>>, %arg2: memref<32x40xf32, #tpu.memory_space<vmem>>, %arg3: memref<1x40xf32, #tpu.memory_space<vmem>>, %arg4: memref<40x10xf32, #tpu.memory_space<vmem>>, %arg5: memref<1x10xf32, #tpu.memory_space<vmem>>, %arg6: memref<10x4xf32, #tpu.memory_space<vmem>>, %arg7: memref<1x4xf32, #tpu.memory_space<vmem>>, %arg8: memref<8x4xf32, #tpu.memory_space<vmem>>) attributes {dimension_semantics = [#tpu.dimension_semantics<parallel>], iteration_bounds = array<i64: 1>, scalar_prefetch = 0 : i64, scratch_operands = 0 : i64, tpu.core_type = #tpu.core_type<tc>, window_params = [{transform_indices = @transform_0, window_bounds = array<i64: 8, 32>}, {pipeline_mode = #tpu.pipeline_mode<synchronous>, transform_indices = @transform_1, window_bounds = array<i64: 32, 40>}, {pipeline_mode = #tpu.pipeline_mode<synchronous>, transform_indices = @transform_2, window_bounds = array<i64: 1, 40>}, {pipeline_mode = #tpu.pipeline_mode<synchronous>, transform_indices = @transform_3, window_bounds = array<i64: 40, 10>}, {pipeline_mode = #tpu.pipeline_mode<synchronous>, transform_indices = @transform_4, window_bounds = array<i64: 1, 10>}, {pipeline_mode = #tpu.pipeline_mode<synchronous>, transform_indices = @transform_5, window_bounds = array<i64: 10, 4>}, {pipeline_mode = #tpu.pipeline_mode<synchronous>, transform_indices = @transform_6, window_bounds = array<i64: 1, 4>}, {transform_indices = @transform_7, window_bounds = array<i64: 8, 4>}]} {
    %c0 = arith.constant 0 : index
    %c0_0 = arith.constant 0 : index
    %0 = vector.load %arg1[%c0, %c0_0] : memref<8x32xf32, #tpu.memory_space<vmem>>, vector<8x32xf32>
    %c0_1 = arith.constant 0 : index
    %c0_2 = arith.constant 0 : index
    %1 = vector.load %arg2[%c0_1, %c0_2] : memref<32x40xf32, #tpu.memory_space<vmem>>, vector<32x40xf32>
    %cst = arith.constant dense<0.000000e+00> : vector<8x40xf32>
    %2 = tpu.matmul %0, %1, %cst {dimension_numbers = #tpu.dot_dimension_numbers<[1], [0], [0], [1], [0, 0, 1, 1], [], []>} : vector<8x32xf32>, vector<32x40xf32>, vector<8x40xf32> -> vector<8x40xf32>
    %c0_3 = arith.constant 0 : index
    %c0_4 = arith.constant 0 : index
    %3 = vector.load %arg3[%c0_3, %c0_4] : memref<1x40xf32, #tpu.memory_space<vmem>>, vector<1x40xf32>
    %4 = vector.broadcast %3 : vector<1x40xf32> to vector<8x40xf32>
    %5 = arith.addf %2, %4 : vector<8x40xf32>
    %cst_5 = arith.constant 0.000000e+00 : f32
    %6 = vector.broadcast %cst_5 : f32 to vector<8x40xf32>
    %7 = arith.maximumf %5, %6 : vector<8x40xf32>
    %c0_6 = arith.constant 0 : index
    %c0_7 = arith.constant 0 : index
    %8 = vector.load %arg4[%c0_6, %c0_7] : memref<40x10xf32, #tpu.memory_space<vmem>>, vector<40x10xf32>
    %cst_8 = arith.constant dense<0.000000e+00> : vector<8x10xf32>
    %9 = tpu.matmul %7, %8, %cst_8 {dimension_numbers = #tpu.dot_dimension_numbers<[1], [0], [0], [1], [0, 0, 1, 1], [], []>} : vector<8x40xf32>, vector<40x10xf32>, vector<8x10xf32> -> vector<8x10xf32>
    %c0_9 = arith.constant 0 : index
    %c0_10 = arith.constant 0 : index
    %10 = vector.load %arg5[%c0_9, %c0_10] : memref<1x10xf32, #tpu.memory_space<vmem>>, vector<1x10xf32>
    %11 = vector.broadcast %10 : vector<1x10xf32> to vector<8x10xf32>
    %12 = arith.addf %9, %11 : vector<8x10xf32>
    %cst_11 = arith.constant 0.000000e+00 : f32
    %13 = vector.broadcast %cst_11 : f32 to vector<8x10xf32>
    %14 = arith.maximumf %12, %13 : vector<8x10xf32>
    %c0_12 = arith.constant 0 : index
    %c0_13 = arith.constant 0 : index
    %15 = vector.load %arg6[%c0_12, %c0_13] : memref<10x4xf32, #tpu.memory_space<vmem>>, vector<10x4xf32>
    %cst_14 = arith.constant dense<0.000000e+00> : vector<8x4xf32>
    %16 = tpu.matmul %14, %15, %cst_14 {dimension_numbers = #tpu.dot_dimension_numbers<[1], [0], [0], [1], [0, 0, 1, 1], [], []>} : vector<8x10xf32>, vector<10x4xf32>, vector<8x4xf32> -> vector<8x4xf32>
    %c0_15 = arith.constant 0 : index
    %c0_16 = arith.constant 0 : index
    %17 = vector.load %arg7[%c0_15, %c0_16] : memref<1x4xf32, #tpu.memory_space<vmem>>, vector<1x4xf32>
    %18 = vector.broadcast %17 : vector<1x4xf32> to vector<8x4xf32>
    %19 = arith.addf %16, %18 : vector<8x4xf32>
    %cst_17 = arith.constant dense<0xFF800000> : vector<8xf32>
    %20 = vector.multi_reduction <maximumf>, %19, %cst_17 [1] : vector<8x4xf32> to vector<8xf32>
    %21 = vector.shape_cast %20 : vector<8xf32> to vector<8x1xf32>
    %22 = vector.broadcast %21 : vector<8x1xf32> to vector<8x4xf32>
    %23 = arith.subf %19, %22 : vector<8x4xf32>
    %24 = math.exp %23 : vector<8x4xf32>
    %cst_18 = arith.constant dense<0.000000e+00> : vector<8xf32>
    %25 = vector.multi_reduction <add>, %24, %cst_18 [1] : vector<8x4xf32> to vector<8xf32>
    %26 = vector.shape_cast %25 : vector<8xf32> to vector<8x1xf32>
    %27 = vector.broadcast %26 : vector<8x1xf32> to vector<8x4xf32>
    %28 = arith.divf %24, %27 : vector<8x4xf32>
    %c0_19 = arith.constant 0 : index
    %c0_20 = arith.constant 0 : index
    %29 = vector.load %arg8[%c0_19, %c0_20] : memref<8x4xf32, #tpu.memory_space<vmem>>, vector<8x4xf32>
    tpu.vector_store %arg8[%c0_19, %c0_20], %28 {strides = array<i32>} : memref<8x4xf32, #tpu.memory_space<vmem>>, vector<8x4xf32>,
    return
  }
  func.func @transform_0(%arg0: i32) -> (i32, i32) {
    %c0_i32 = arith.constant 0 : i32
    %c0_i32_0 = arith.constant 0 : i32
    return %arg0, %c0_i32 : i32, i32
  }
  func.func @transform_1(%arg0: i32) -> (i32, i32) {
    %c0_i32 = arith.constant 0 : i32
    %c0_i32_0 = arith.constant 0 : i32
    %c0_i32_1 = arith.constant 0 : i32
    return %c0_i32, %c0_i32_0 : i32, i32
  }
  func.func @transform_2(%arg0: i32) -> (i32, i32) {
    %c0_i32 = arith.constant 0 : i32
    %c0_i32_0 = arith.constant 0 : i32
    %c0_i32_1 = arith.constant 0 : i32
    return %c0_i32, %c0_i32_0 : i32, i32
  }
  func.func @transform_3(%arg0: i32) -> (i32, i32) {
    %c0_i32 = arith.constant 0 : i32
    %c0_i32_0 = arith.constant 0 : i32
    %c0_i32_1 = arith.constant 0 : i32
    return %c0_i32, %c0_i32_0 : i32, i32
  }
  func.func @transform_4(%arg0: i32) -> (i32, i32) {
    %c0_i32 = arith.constant 0 : i32
    %c0_i32_0 = arith.constant 0 : i32
    %c0_i32_1 = arith.constant 0 : i32
    return %c0_i32, %c0_i32_0 : i32, i32
  }
  func.func @transform_5(%arg0: i32) -> (i32, i32) {
    %c0_i32 = arith.constant 0 : i32
    %c0_i32_0 = arith.constant 0 : i32
    %c0_i32_1 = arith.constant 0 : i32
    return %c0_i32, %c0_i32_0 : i32, i32
  }
  func.func @transform_6(%arg0: i32) -> (i32, i32) {
    %c0_i32 = arith.constant 0 : i32
    %c0_i32_0 = arith.constant 0 : i32
    %c0_i32_1 = arith.constant 0 : i32
    return %c0_i32, %c0_i32_0 : i32, i32
  }
  func.func @transform_7(%arg0: i32) -> (i32, i32) {
    %c0_i32 = arith.constant 0 : i32
    %c0_i32_0 = arith.constant 0 : i32
    return %arg0, %c0_i32 : i32, i32
  }
}

</mosaic_0001>

<bundles_post_ra>
// kernel: tpu_custom_call.1
= control target key start
LH: loop header
LB: loop body
LE: loop exit
PB: predicated region body
PF: predicated region fallthrough
CT: control target
= control target key end

     0   :  { %12 = vsyncpa [#allocation3], 0  ;;  %v420_v2 = vmov 0.0|0.0   ;;  %vm421_vm0 = vmmov 0   ;;  %v422_v6 = vmov 0.0   ;;  %vm39_vm1 = vcmask 261120   ;;  %s530_s0 = inlined_call_operand.vmem [shape: f32[2,32], index: 0, kind: input, shape index: {}]   ;;  %s531_s1 = inlined_call_operand.vmem [shape: f32[32,40], index: 1, kind: input, shape index: {}]   ;;  %s532_s2 = inlined_call_operand.vmem [shape: f32[1,40], index: 2, kind: input, shape index: {}]   ;;  %s533_s3 = inlined_call_operand.vmem [shape: f32[40,10], index: 3, kind: input, shape index: {}]   ;;  %s534_s4 = inlined_call_operand.vmem [shape: f32[1,10], index: 4, kind: input, shape index: {}]   ;;  %s535_s5 = inlined_call_operand.vmem [shape: f32[10,4], index: 5, kind: input, shape index: {}]   ;;  %s536_s6 = inlined_call_operand.vmem [shape: f32[1,4], index: 6, kind: input, shape index: {}]   ;;  %s537_s7 = inlined_call_operand.hbm [shape: f32[2,4], index: 7, kind: output, shape index: {}]  }
   0x1   :  { %v28_v0 = vld [vmem:[%s531_s1] sm:$0xff]  ;;  %v29_v1 = vld [vmem:[%s531_s1 + $0x8] sm:$0xff]  ;;  %369 = vmatprep.subr.bf16.mxu0 %v420_v2  ;;  %v30_v4 = vld [vmem:[%s531_s1 + $0x10] sm:$0xff]  ;;  %375 = vmatprep.subr.bf16.mxu1 %v420_v2  ;;  %vm126_vm2 = vcmask 326656   ;;  %vm214_vm3 = vcmask 1041408   ;;  %vm423_vm4 = vmmov 1  }
   0x2   :  { %v370_v3 = vpack.c.bf16 %v29_v1, %v28_v0  ;;  %v31_v5 = vld [vmem:[%s531_s1 + $0x18] sm:$0xff]  ;;  %346 = vmatprep.mubr.msk.f32.mxu0 %vm421_vm0, %v422_v6  ;;  %v114_v7 = vld [vmem:[%s533_s3] sm:$0xff]  ;;  %v115_v8 = vld [vmem:[%s533_s3 + $0x8] sm:$0xff]  ;;  %359 = vmatprep.mubr.msk.f32.mxu1 %vm421_vm0, %v422_v6  ;;  %vm210_vm6 = vcmask 80896   ;;  %vm288_vm7 = vcmask 31744  }
   0x3   :  { %v373_v9 = vpack.c.bf16 %v31_v5, %v30_v4  ;;  %v376_v10 = vpack.c.bf16 %v115_v8, %v114_v7  ;;  %v27_v11 = vld [vmem:[%s530_s0] sm:$0xff]  ;;  %v116_v12 = vld [vmem:[%s533_s3 + $0x10] sm:$0xff]  ;;  %v117_v13 = vld [vmem:[%s533_s3 + $0x18] sm:$0xff] }
   0x4   :  { %371 = vmatpush3.bf16.msra.mxu0 %v370_v3  ;;  %v379_v14 = vpack.c.bf16 %v117_v13, %v116_v12  ;;  %v118_v15 = vld [vmem:[%s533_s3 + $0x20] sm:$0xff]  ;;  %v202_v22 = vld [vmem:[%s535_s5 + $0x8] sm:$0x3]  ;;  %vm383_vm5 = vmpackc.low %vm214_vm3, %vm423_vm4 }
   0x5   :  { %372 = vmatprep.subr.bf16.mxu0 %v420_v2  ;;  %377 = vmatpush3.bf16.msra.mxu1 %v376_v10  ;;  %v317_v16 = vld [vmem:[%s532_s2] ss:$0 sm:$0xff] }
   0x6   :  { %378 = vmatprep.subr.bf16.mxu1 %v420_v2  ;;  %v201_v21 = vld [vmem:[%s535_s5] sm:$0xff] }
   0x7   :  { %v382_v23 = vpack.c.bf16 %v202_v22, %v201_v21  ;;  %v319_v24 = vld [vmem:[%s534_s4] ss:$0 sm:$0xff] }
   0x8   :  { %374 = vmatpush3.bf16.msra.mxu0 %v373_v9  ;;  %v321_v29 = vld [vmem:[%s536_s6] ss:$0 sm:$0xff] }
   0x9   :  { %381 = vmatprep.subr.bf16.mxu0 %v420_v2  ;;  %380 = vmatpush3.bf16.msra.mxu1 %v379_v14 }
   0xa   :  { %357 = vmatprep.subr.mxu1 %v422_v6 }
   0xb   :  { %347 = vmatmul.mubr.msk.f32.vlgmr.msra.gmra.mrb[0].mxu0 %vm39_vm1, %v27_v11 }
   0xc   :  { %366 = vmatprep.mubr.msk.f32.mxu0 %vm421_vm0, %v422_v6  ;;  %384 = vmatpush3.bf16.msk.msra.mxu0 %vm383_vm5, %v382_v23 }
   0xd   :  { %358 = vmatpush3.msra.mxu1 %v118_v15 }
  0xde   :  { %v109_v17 = vpop.f32.mrb[0].mxu0 }
  0xdf   :  { %v110_v18 = vadd.f32 %v317_v16, %v109_v17  ;;  %v348_v19 = vpop.f32.mrb[1].mxu0 }
  0xe1   :  { %v113_v20 = vmax.f32 %v110_v18, 0.0 }
  0xe3   :  { %360 = vmatmul.mubr.msk.f32.vlgmr.msra.gmra.mrb[0].mxu1 %vm126_vm2, %v113_v20 }
 0x1b6   :  { %v196_v25 = vpop.f32.mrb[0].mxu1 }
 0x1b7   :  { %v197_v26 = vadd.f32 %v319_v24, %v196_v25  ;;  %v361_v27 = vpop.f32.mrb[1].mxu1 }
 0x1b9   :  { %v200_v28 = vmax.f32 %v197_v26, 0.0 }
 0x1bb   :  { %367 = vmatmul.mubr.msk.f32.vlgmr.msra.gmra.mrb[2].mxu0 %vm210_vm6, %v200_v28 }
 0x28e   :  { %v284_v30 = vpop.f32.mrb[2].mxu0 }
 0x28f   :  { %v285_v31 = vadd.f32 %v321_v29, %v284_v30  ;;  %v368_v32 = vpop.f32.mrb[3].mxu0 }
 0x291   :  { %v289_v33 = vsel %vm288_vm7, %v285_v31, -inf }
 0x292   :  { %290 = vmax.xlane.f32.xlu0 %v289_v33 }
 0x31f   :  { %v291_v34 = vpop.xlane.xlu0 %290 }
 0x320   :  { %v292_v35 = vsub.f32 %v285_v31, %v291_v34 }
 0x322   :  { %v293_v36 = vmul.f32 1.442695, %v292_v35 }
 0x324   :  { %392 = vpow2.f32 %v293_v36 }
 0x32e   :  { %v393_v37 = vpop.eup %392 }
 0x32f   :  { %v295_v38 = vsel %vm288_vm7, %v393_v37, 0.0 }
 0x330   :  { %296 = vadd.xlane.f32.xlu0 %v295_v38 }
 0x3bd   :  { %v297_v39 = vpop.xlane.xlu0 %296 }
 0x3be   :  { %394 = vrcp.f32 %v297_v39 }
 0x3c8   :  { %v395_v40 = vpop.eup %394 }
 0x3c9   :  { %v299_v41 = vmul.f32 %v395_v40, %v393_v37 }
 0x3cb   :  { %300 = vst.msk [vmem:[#allocation2] sm:$0xff] %vm288_vm7, %v299_v41 }
 0x3cc   :  { %305 = vsyncadd [#allocation3], 96  ;;  %s424_s4 = smov [#allocation2]  }
 0x3cd   :  { %s306_s5 = sshll.u32 %s424_s4, 4  ;;  %s307_s5 = int_to_ptr.vmem [resolvable:$true] %s306_s5 }
 0x3ce   :  { %s396_s6 = scalar_lea.vmem %s307_s5, 32  ;;  %s400_s27 = scalar_lea.vmem %s307_s5, 128 }
 0x3cf   :  { %p397_p0 = scmp.ne.s32.totalorder %s307_s5, %s396_s6  ;;  %p401_p1 = scmp.lt.s32.totalorder %s307_s5, %s307_s5 }
 0x3d0   :  { %p402_p2 = scmp.lt.s32.totalorder %s400_s27, %s396_s6 }
 0x3d2   :  { %p403_p3 = por %p402_p2, %p401_p1 }
 0x3d4   :  { %p404_p4 = pnand %p403_p3, %p397_p0 }
 0x3d6   :  { %407 = shalt.err (!%p404_p4)
}
 0x3d7   :  { %s408_s30 = scalar_lea.hbm %s537_s7, 32 }
 0x3d8   :  { %p409_p5 = scmp.ne.s32.totalorder %s537_s7, %s408_s30  ;;  %p412_p6 = scmp.lt.u32.totalorder %s408_s30, %s537_s7 }
 0x3da   :  { %p414_p7 = pnand %p412_p6, %p409_p5 }
 0x3dc   :  { %417 = shalt.err (!%p414_p7)
}
 0x3dd   :  { %s425_s12 = smov 32   ;;  %s426_s1 = smov 2  }
 0x3de   :  { %312 = dma.vmem_to_hbm [thread:$0]  %s307_s5, 32, %s537_s7, [#allocation3], %s425_s12, %s425_s12, %s426_s1  }
 0x3df   :  { %418 = dma.done.wait [#allocation3], 128  }
 0x3e0   :  { %419 = vsyncadd [#allocation3], 4294967168 }
 0x3e1   :  { %316 = vsyncpa [#allocation3], 1 }

</bundles_post_ra>
